<compile_context>
chip_gen: v7x
topology: tpu7x:2x2x1
jax: 0.10.0
libtpu: 0.0.40
codegen_flags: <defaults>
</compile_context>

<pallas_src>
import functools

import jax
import jax.numpy as jnp
from jax.experimental import pallas as pl
from jax.experimental.pallas import tpu as pltpu

KH = 3
KW = 3


# ----------------------------- Pallas kernel --------------------------------
def _conv_bn_relu_kernel(x_ref, w_ref, out_ref, patch_ref, *, N, H, W, C_in):
    # x_ref:     [N, C_in, L]         flattened (H-padded) image rows, +1 leading zero
    # w_ref:     [8, KPAD]            BN-scale-folded weights (kw-major cols),
    #                                 col KROWS = folded shift, rest zero-padded
    # out_ref:   [N, 8, H*W]          lane-dense output (H*W on lanes), rows 6..7 pad
    # patch_ref: [KPAD, H*W]          VMEM scratch: im2col patch for one image
    HW = H * W
    KROWS = KW * KH * C_in           # 27 real contraction rows
    KPAD = patch_ref.shape[0]        # padded to 32
    G = KH * C_in                    # 9 rows per kw-group

    # Constant rows of the patch, written once (scratch persists):
    #   row KROWS  = ones  -> contributes the folded BN/bias shift via w column
    #   rows >KROWS = zeros -> inert padding of the contraction dim
    patch_ref[KROWS:KROWS + 1, :] = jnp.ones((1, HW), jnp.float32)
    if KROWS + 1 < KPAD:
        patch_ref[KROWS + 1:KPAD, :] = jnp.zeros((KPAD - KROWS - 1, HW), jnp.float32)

    # Lane masks for the two kw-groups whose flattened shift wraps across rows:
    # kw == 0 is invalid at w == 0, kw == KW-1 is invalid at w == W-1.
    col = jax.lax.broadcasted_iota(jnp.int32, (1, HW), 1)
    wpos = col % W
    mask_left = (wpos != 0).astype(jnp.float32)
    mask_right = (wpos != (W - 1)).astype(jnp.float32)

    for n in range(N):                       # tiny static batch -> unrolled
        # Gather the 9 shifted lane-slices into the patch, kw-major row order
        # (row = (kw*KH + kh)*C_in + c) so each kw-group is sublane-contiguous.
        for kw in range(KW):
            for kh in range(KH):
                s = kh * W + kw              # static lane offset of this tap
                r = (kw * KH + kh) * C_in
                patch_ref[r:r + C_in, :] = x_ref[n, :, s:s + HW]
        # Fix the row-wrap columns once per boundary group (mask commutes with
        # the contraction because it acts per output lane).
        patch_ref[0:G, :] = patch_ref[0:G, :] * mask_left
        patch_ref[2 * G:3 * G, :] = patch_ref[2 * G:3 * G, :] * mask_right

        # One MXU dot per image: [8, KPAD] @ [KPAD, HW] -> [8, HW].
        # The shift is already folded in via the ones-row, so epilogue = ReLU.
        y = jnp.dot(w_ref[...], patch_ref[...], preferred_element_type=jnp.float32)
        out_ref[n] = jnp.maximum(y, 0.0).astype(out_ref.dtype)


def conv_bn_relu_pallas(xflat, w_pad, *, N, C_in, C_out_pad, H, W, L, KPAD):
    HW = H * W
    kernel = functools.partial(_conv_bn_relu_kernel, N=N, H=H, W=W, C_in=C_in)

    flops = 2 * N * HW * C_out_pad * KPAD
    bytes_accessed = 4 * (xflat.size + w_pad.size + N * C_out_pad * HW)

    return pl.pallas_call(
        kernel,
        out_shape=jax.ShapeDtypeStruct((N, C_out_pad, HW), jnp.float32),
        grid=(1,),                                   # whole batch in one step
        in_specs=[
            pl.BlockSpec((N, C_in, L), lambda i: (0, 0, 0)),
            pl.BlockSpec((C_out_pad, KPAD), lambda i: (0, 0)),
        ],
        out_specs=pl.BlockSpec((N, C_out_pad, HW), lambda i: (0, 0, 0)),
        scratch_shapes=[pltpu.VMEM((KPAD, HW), jnp.float32)],
        compiler_params=pltpu.CompilerParams(
            dimension_semantics=("arbitrary",)),
        cost_estimate=pl.CostEstimate(flops=flops, transcendentals=0,
                                      bytes_accessed=bytes_accessed),
    )(xflat, w_pad)


# ------------------------------- JAX glue ------------------------------------
def model_with_ref_forward(x, params):
    """Forward of ModelWithRef: ConvBNRelu(3, 6, k=3, bn) on NCHW input."""
    N, C_in, H, W = x.shape
    HW = H * W
    eps = 1e-5

    w = params["conv_w"].astype(jnp.float32)     # [C_out, C_in, 3, 3]
    b = params["conv_b"].astype(jnp.float32)     # [C_out]
    gamma = params["bn_gamma"].astype(jnp.float32)
    beta = params["bn_beta"].astype(jnp.float32)
    mean = params["bn_mean"].astype(jnp.float32)
    var = params["bn_var"].astype(jnp.float32)
    C_out = w.shape[0]

    # Fold BN (eval mode): scale into the weights; shift becomes an extra
    # weight column matched to the kernel's in-patch ones-row.
    scale = gamma / jnp.sqrt(var + eps)                              # [C_out]
    w_scaled = w * scale[:, None, None, None]                        # [C_out,C_in,3,3]
    shift = beta - mean * scale + b * scale                          # [C_out]

    # kw-major column order to match the in-kernel patch row order:
    # col index = (kw*KH + kh)*C_in + c
    w_cols = jnp.transpose(w_scaled, (0, 3, 2, 1)).reshape(C_out, KW * KH * C_in)
    KROWS = KW * KH * C_in                         # 27
    KPAD = pl.cdiv(KROWS + 1, 8) * 8               # 32 (shift row + zero pad)
    C_out_pad = 8                                  # full sublane tile of outputs
    w_pad = jnp.zeros((C_out_pad, KPAD), jnp.float32)
    w_pad = w_pad.at[:C_out, :KROWS].set(w_cols)
    w_pad = w_pad.at[:C_out, KROWS].set(shift)     # shift column * ones-row

    # H-pad with zero rows, flatten rows, prepend one zero so every tap's slice
    # start is >= 0, then zero-pad the lane dim up to a 128 multiple that covers
    # the largest shifted slice. Only ~1.1x the input bytes (no 9x im2col).
    xq = jnp.pad(x.astype(jnp.float32), ((0, 0), (0, 0), (1, 1), (0, 0)))
    xflat = xq.reshape(N, C_in, (H + 2) * W)
    max_start = (KH - 1) * W + (KW - 1)
    L = pl.cdiv(1 + max(max_start + HW, (H + 2) * W), 128) * 128
    xflat = jnp.pad(xflat, ((0, 0), (0, 0), (1, L - 1 - (H + 2) * W)))

    out_pad = conv_bn_relu_pallas(xflat, w_pad, N=N, C_in=C_in,
                                  C_out_pad=C_out_pad, H=H, W=W, L=L, KPAD=KPAD)
    # [N, 8, H*W]: slice the 2 pad channels, reshape to NCHW (lane-dense layout).
    return out_pad[:, :C_out, :].reshape(N, C_out, H, W)


def reference_forward(x, params):
    """Pure-JAX reference (lax.conv) for the correctness check."""
    eps = 1e-5
    y = jax.lax.conv_general_dilated(
        x, params["conv_w"], window_strides=(1, 1), padding=((1, 1), (1, 1)),
        dimension_numbers=("NCHW", "OIHW", "NCHW"))
    y = y + params["conv_b"][None, :, None, None]
    inv_std = 1.0 / jnp.sqrt(params["bn_var"] + eps)
    y = (y - params["bn_mean"][None, :, None, None]) * \
        (params["bn_gamma"] * inv_std)[None, :, None, None] + \
        params["bn_beta"][None, :, None, None]
    return jnp.maximum(y, 0.0)


# --------------------------------- main --------------------------------------
if __name__ == "__main__":
    key = jax.random.PRNGKey(0)
    k_x, k_w, k_b, k_g, k_bt, k_m, k_v = jax.random.split(key, 7)

    N, C_in, H, W, C_out = 2, 3, 16, 16, 6
    x = jax.random.normal(k_x, (N, C_in, H, W), dtype=jnp.float32)

    params = {
        "conv_w": jax.random.normal(k_w, (C_out, C_in, 3, 3), jnp.float32) * 0.1,
        "conv_b": jax.random.normal(k_b, (C_out,), jnp.float32) * 0.1,
        "bn_gamma": 1.0 + 0.1 * jax.random.normal(k_g, (C_out,), jnp.float32),
        "bn_beta": 0.1 * jax.random.normal(k_bt, (C_out,), jnp.float32),
        "bn_mean": 0.1 * jax.random.normal(k_m, (C_out,), jnp.float32),
        "bn_var": jnp.abs(jax.random.normal(k_v, (C_out,), jnp.float32)) + 0.5,
    }

    fwd = jax.jit(model_with_ref_forward)
    out = jax.block_until_ready(fwd(x, params))

    ref = jax.block_until_ready(reference_forward(x, params))
    assert out.shape == (N, C_out, H, W), out.shape
    assert jnp.allclose(out, ref, atol=1e-4, rtol=1e-4), "mismatch vs reference"

    print("KERNEL_OK")
</pallas_src>

<mosaic_0001>
module attributes {stable_mosaic.version = 11 : i64} {
  func.func @_conv_bn_relu_kernel(%arg0: i32, %arg1: memref<2x3x384xf32, #tpu.memory_space<vmem>>, %arg2: memref<8x32xf32, #tpu.memory_space<vmem>>, %arg3: memref<2x8x256xf32, #tpu.memory_space<vmem>>, %arg4: memref<32x256xf32, #tpu.memory_space<vmem>>) attributes {dimension_semantics = [#tpu.dimension_semantics<arbitrary>], iteration_bounds = array<i64: 1>, scalar_prefetch = 0 : i64, scratch_operands = 1 : i64, tpu.core_type = #tpu.core_type<tc>, window_params = [{pipeline_mode = #tpu.pipeline_mode<synchronous>, transform_indices = @transform_0, window_bounds = array<i64: 2, 3, 384>}, {pipeline_mode = #tpu.pipeline_mode<synchronous>, transform_indices = @transform_1, window_bounds = array<i64: 8, 32>}, {pipeline_mode = #tpu.pipeline_mode<synchronous>, transform_indices = @transform_2, window_bounds = array<i64: 2, 8, 256>}]} {
    %cst = arith.constant 1.000000e+00 : f32
    %0 = vector.broadcast %cst : f32 to vector<1x256xf32>
    %c27 = arith.constant 27 : index
    %c0 = arith.constant 0 : index
    %1 = vector.load %arg4[%c27, %c0] : memref<32x256xf32, #tpu.memory_space<vmem>>, vector<1x256xf32>
    tpu.vector_store %arg4[%c27, %c0], %0 {strides = array<i32>} : memref<32x256xf32, #tpu.memory_space<vmem>>, vector<1x256xf32>,
    %cst_0 = arith.constant 0.000000e+00 : f32
    %2 = vector.broadcast %cst_0 : f32 to vector<4x256xf32>
    %c28 = arith.constant 28 : index
    %c0_1 = arith.constant 0 : index
    %3 = vector.load %arg4[%c28, %c0_1] : memref<32x256xf32, #tpu.memory_space<vmem>>, vector<4x256xf32>
    tpu.vector_store %arg4[%c28, %c0_1], %2 {strides = array<i32>} : memref<32x256xf32, #tpu.memory_space<vmem>>, vector<4x256xf32>,
    %4 = tpu.iota {dimensions = array<i32: 1>} : vector<1x256xi32>
    %c16_i32 = arith.constant 16 : i32
    %c0_i32 = arith.constant 0 : i32
    %5 = arith.cmpi eq, %c16_i32, %c0_i32 : i32
    %c1_i32 = arith.constant 1 : i32
    %6 = arith.select %5, %c1_i32, %c16_i32 : i32
    %7 = vector.broadcast %6 : i32 to vector<1x256xi32>
    %8 = arith.remsi %4, %7 : vector<1x256xi32>
    %c0_i32_2 = arith.constant 0 : i32
    %9 = vector.broadcast %c0_i32_2 : i32 to vector<1x256xi32>
    %10 = arith.cmpi ne, %8, %9 : vector<1x256xi32>
    %c0_i32_3 = arith.constant 0 : i32
    %11 = vector.broadcast %c0_i32_3 : i32 to vector<1x256xi32>
    %12 = arith.cmpi slt, %8, %11 : vector<1x256xi32>
    %c0_i32_4 = arith.constant 0 : i32
    %13 = arith.cmpi slt, %6, %c0_i32_4 : i32
    %14 = vector.broadcast %13 : i1 to vector<1x256xi1>
    %15 = vector.broadcast %14 : vector<1x256xi1> to vector<1x256xi1>
    %16 = arith.xori %12, %15 : vector<1x256xi1>
    %17 = arith.andi %16, %10 : vector<1x256xi1>
    %18 = vector.broadcast %6 : i32 to vector<1x256xi32>
    %19 = arith.addi %8, %18 : vector<1x256xi32>
    %20 = arith.select %17, %19, %8 : vector<1x256xi1>, vector<1x256xi32>
    %c0_i32_5 = arith.constant 0 : i32
    %21 = vector.broadcast %c0_i32_5 : i32 to vector<1x256xi32>
    %22 = arith.cmpi ne, %20, %21 : vector<1x256xi32>
    %23 = arith.extui %22 : vector<1x256xi1> to vector<1x256xi32>
    %24 = arith.sitofp %23 : vector<1x256xi32> to vector<1x256xf32>
    %c15_i32 = arith.constant 15 : i32
    %25 = vector.broadcast %c15_i32 : i32 to vector<1x256xi32>
    %26 = arith.cmpi ne, %20, %25 : vector<1x256xi32>
    %27 = arith.extui %26 : vector<1x256xi1> to vector<1x256xi32>
    %28 = arith.sitofp %27 : vector<1x256xi32> to vector<1x256xf32>
    %c0_6 = arith.constant 0 : index
    %c0_7 = arith.constant 0 : index
    %c0_8 = arith.constant 0 : index
    %29 = vector.load %arg1[%c0_6, %c0_7, %c0_8] : memref<2x3x384xf32, #tpu.memory_space<vmem>>, vector<1x3x256xf32>
    %30 = vector.shape_cast %29 : vector<1x3x256xf32> to vector<3x256xf32>
    %c0_9 = arith.constant 0 : index
    %c0_10 = arith.constant 0 : index
    %31 = vector.load %arg4[%c0_9, %c0_10] : memref<32x256xf32, #tpu.memory_space<vmem>>, vector<3x256xf32>
    tpu.vector_store %arg4[%c0_9, %c0_10], %30 {strides = array<i32>} : memref<32x256xf32, #tpu.memory_space<vmem>>, vector<3x256xf32>,
    %c0_11 = arith.constant 0 : index
    %c0_12 = arith.constant 0 : index
    %c16 = arith.constant 16 : index
    %32 = vector.load %arg1[%c0_11, %c0_12, %c16] : memref<2x3x384xf32, #tpu.memory_space<vmem>>, vector<1x3x256xf32>
    %33 = vector.shape_cast %32 : vector<1x3x256xf32> to vector<3x256xf32>
    %c3 = arith.constant 3 : index
    %c0_13 = arith.constant 0 : index
    %34 = vector.load %arg4[%c3, %c0_13] : memref<32x256xf32, #tpu.memory_space<vmem>>, vector<3x256xf32>
    tpu.vector_store %arg4[%c3, %c0_13], %33 {strides = array<i32>} : memref<32x256xf32, #tpu.memory_space<vmem>>, vector<3x256xf32>,
    %c0_14 = arith.constant 0 : index
    %c0_15 = arith.constant 0 : index
    %c32 = arith.constant 32 : index
    %35 = vector.load %arg1[%c0_14, %c0_15, %c32] : memref<2x3x384xf32, #tpu.memory_space<vmem>>, vector<1x3x256xf32>
    %36 = vector.shape_cast %35 : vector<1x3x256xf32> to vector<3x256xf32>
    %c6 = arith.constant 6 : index
    %c0_16 = arith.constant 0 : index
    %37 = vector.load %arg4[%c6, %c0_16] : memref<32x256xf32, #tpu.memory_space<vmem>>, vector<3x256xf32>
    tpu.vector_store %arg4[%c6, %c0_16], %36 {strides = array<i32>} : memref<32x256xf32, #tpu.memory_space<vmem>>, vector<3x256xf32>,
    %c0_17 = arith.constant 0 : index
    %c0_18 = arith.constant 0 : index
    %c1 = arith.constant 1 : index
    %38 = vector.load %arg1[%c0_17, %c0_18, %c1] : memref<2x3x384xf32, #tpu.memory_space<vmem>>, vector<1x3x256xf32>
    %39 = vector.shape_cast %38 : vector<1x3x256xf32> to vector<3x256xf32>
    %c9 = arith.constant 9 : index
    %c0_19 = arith.constant 0 : index
    %40 = vector.load %arg4[%c9, %c0_19] : memref<32x256xf32, #tpu.memory_space<vmem>>, vector<3x256xf32>
    tpu.vector_store %arg4[%c9, %c0_19], %39 {strides = array<i32>} : memref<32x256xf32, #tpu.memory_space<vmem>>, vector<3x256xf32>,
    %c0_20 = arith.constant 0 : index
    %c0_21 = arith.constant 0 : index
    %c17 = arith.constant 17 : index
    %41 = vector.load %arg1[%c0_20, %c0_21, %c17] : memref<2x3x384xf32, #tpu.memory_space<vmem>>, vector<1x3x256xf32>
    %42 = vector.shape_cast %41 : vector<1x3x256xf32> to vector<3x256xf32>
    %c12 = arith.constant 12 : index
    %c0_22 = arith.constant 0 : index
    %43 = vector.load %arg4[%c12, %c0_22] : memref<32x256xf32, #tpu.memory_space<vmem>>, vector<3x256xf32>
    tpu.vector_store %arg4[%c12, %c0_22], %42 {strides = array<i32>} : memref<32x256xf32, #tpu.memory_space<vmem>>, vector<3x256xf32>,
    %c0_23 = arith.constant 0 : index
    %c0_24 = arith.constant 0 : index
    %c33 = arith.constant 33 : index
    %44 = vector.load %arg1[%c0_23, %c0_24, %c33] : memref<2x3x384xf32, #tpu.memory_space<vmem>>, vector<1x3x256xf32>
    %45 = vector.shape_cast %44 : vector<1x3x256xf32> to vector<3x256xf32>
    %c15 = arith.constant 15 : index
    %c0_25 = arith.constant 0 : index
    %46 = vector.load %arg4[%c15, %c0_25] : memref<32x256xf32, #tpu.memory_space<vmem>>, vector<3x256xf32>
    tpu.vector_store %arg4[%c15, %c0_25], %45 {strides = array<i32>} : memref<32x256xf32, #tpu.memory_space<vmem>>, vector<3x256xf32>,
    %c0_26 = arith.constant 0 : index
    %c0_27 = arith.constant 0 : index
    %c2 = arith.constant 2 : index
    %47 = vector.load %arg1[%c0_26, %c0_27, %c2] : memref<2x3x384xf32, #tpu.memory_space<vmem>>, vector<1x3x256xf32>
    %48 = vector.shape_cast %47 : vector<1x3x256xf32> to vector<3x256xf32>
    %c18 = arith.constant 18 : index
    %c0_28 = arith.constant 0 : index
    %49 = vector.load %arg4[%c18, %c0_28] : memref<32x256xf32, #tpu.memory_space<vmem>>, vector<3x256xf32>
    tpu.vector_store %arg4[%c18, %c0_28], %48 {strides = array<i32>} : memref<32x256xf32, #tpu.memory_space<vmem>>, vector<3x256xf32>,
    %c0_29 = arith.constant 0 : index
    %c0_30 = arith.constant 0 : index
    %c18_31 = arith.constant 18 : index
    %50 = vector.load %arg1[%c0_29, %c0_30, %c18_31] : memref<2x3x384xf32, #tpu.memory_space<vmem>>, vector<1x3x256xf32>
    %51 = vector.shape_cast %50 : vector<1x3x256xf32> to vector<3x256xf32>
    %c21 = arith.constant 21 : index
    %c0_32 = arith.constant 0 : index
    %52 = vector.load %arg4[%c21, %c0_32] : memref<32x256xf32, #tpu.memory_space<vmem>>, vector<3x256xf32>
    tpu.vector_store %arg4[%c21, %c0_32], %51 {strides = array<i32>} : memref<32x256xf32, #tpu.memory_space<vmem>>, vector<3x256xf32>,
    %c0_33 = arith.constant 0 : index
    %c0_34 = arith.constant 0 : index
    %c34 = arith.constant 34 : index
    %53 = vector.load %arg1[%c0_33, %c0_34, %c34] : memref<2x3x384xf32, #tpu.memory_space<vmem>>, vector<1x3x256xf32>
    %54 = vector.shape_cast %53 : vector<1x3x256xf32> to vector<3x256xf32>
    %c24 = arith.constant 24 : index
    %c0_35 = arith.constant 0 : index
    %55 = vector.load %arg4[%c24, %c0_35] : memref<32x256xf32, #tpu.memory_space<vmem>>, vector<3x256xf32>
    tpu.vector_store %arg4[%c24, %c0_35], %54 {strides = array<i32>} : memref<32x256xf32, #tpu.memory_space<vmem>>, vector<3x256xf32>,
    %c0_36 = arith.constant 0 : index
    %c0_37 = arith.constant 0 : index
    %56 = vector.load %arg4[%c0_36, %c0_37] : memref<32x256xf32, #tpu.memory_space<vmem>>, vector<9x256xf32>
    %57 = vector.broadcast %24 : vector<1x256xf32> to vector<9x256xf32>
    %58 = arith.mulf %56, %57 : vector<9x256xf32>
    %c0_38 = arith.constant 0 : index
    %c0_39 = arith.constant 0 : index
    %59 = vector.load %arg4[%c0_38, %c0_39] : memref<32x256xf32, #tpu.memory_space<vmem>>, vector<9x256xf32>
    tpu.vector_store %arg4[%c0_38, %c0_39], %58 {strides = array<i32>} : memref<32x256xf32, #tpu.memory_space<vmem>>, vector<9x256xf32>,
    %c18_40 = arith.constant 18 : index
    %c0_41 = arith.constant 0 : index
    %60 = vector.load %arg4[%c18_40, %c0_41] : memref<32x256xf32, #tpu.memory_space<vmem>>, vector<9x256xf32>
    %61 = vector.broadcast %28 : vector<1x256xf32> to vector<9x256xf32>
    %62 = arith.mulf %60, %61 : vector<9x256xf32>
    %c18_42 = arith.constant 18 : index
    %c0_43 = arith.constant 0 : index
    %63 = vector.load %arg4[%c18_42, %c0_43] : memref<32x256xf32, #tpu.memory_space<vmem>>, vector<9x256xf32>
    tpu.vector_store %arg4[%c18_42, %c0_43], %62 {strides = array<i32>} : memref<32x256xf32, #tpu.memory_space<vmem>>, vector<9x256xf32>,
    %c0_44 = arith.constant 0 : index
    %c0_45 = arith.constant 0 : index
    %64 = vector.load %arg2[%c0_44, %c0_45] : memref<8x32xf32, #tpu.memory_space<vmem>>, vector<8x32xf32>
    %c0_46 = arith.constant 0 : index
    %c0_47 = arith.constant 0 : index
    %65 = vector.load %arg4[%c0_46, %c0_47] : memref<32x256xf32, #tpu.memory_space<vmem>>, vector<32x256xf32>
    %cst_48 = arith.constant dense<0.000000e+00> : vector<8x256xf32>
    %66 = tpu.matmul %64, %65, %cst_48 {dimension_numbers = #tpu.dot_dimension_numbers<[1], [0], [0], [1], [0, 0, 1, 1], [], []>} : vector<8x32xf32>, vector<32x256xf32>, vector<8x256xf32> -> vector<8x256xf32>
    %cst_49 = arith.constant 0.000000e+00 : f32
    %67 = vector.broadcast %cst_49 : f32 to vector<8x256xf32>
    %68 = arith.maximumf %66, %67 : vector<8x256xf32>
    %c0_50 = arith.constant 0 : index
    %c0_51 = arith.constant 0 : index
    %c0_52 = arith.constant 0 : index
    %69 = vector.load %arg3[%c0_50, %c0_51, %c0_52] : memref<2x8x256xf32, #tpu.memory_space<vmem>>, vector<1x8x256xf32>
    %70 = vector.shape_cast %69 : vector<1x8x256xf32> to vector<8x256xf32>
    %71 = vector.shape_cast %68 : vector<8x256xf32> to vector<1x8x256xf32>
    tpu.vector_store %arg3[%c0_50, %c0_51, %c0_52], %71 {strides = array<i32>} : memref<2x8x256xf32, #tpu.memory_space<vmem>>, vector<1x8x256xf32>,
    %c1_53 = arith.constant 1 : index
    %c0_54 = arith.constant 0 : index
    %c0_55 = arith.constant 0 : index
    %72 = vector.load %arg1[%c1_53, %c0_54, %c0_55] : memref<2x3x384xf32, #tpu.memory_space<vmem>>, vector<1x3x256xf32>
    %73 = vector.shape_cast %72 : vector<1x3x256xf32> to vector<3x256xf32>
    %c0_56 = arith.constant 0 : index
    %c0_57 = arith.constant 0 : index
    %74 = vector.load %arg4[%c0_56, %c0_57] : memref<32x256xf32, #tpu.memory_space<vmem>>, vector<3x256xf32>
    tpu.vector_store %arg4[%c0_56, %c0_57], %73 {strides = array<i32>} : memref<32x256xf32, #tpu.memory_space<vmem>>, vector<3x256xf32>,
    %c1_58 = arith.constant 1 : index
    %c0_59 = arith.constant 0 : index
    %c16_60 = arith.constant 16 : index
    %75 = vector.load %arg1[%c1_58, %c0_59, %c16_60] : memref<2x3x384xf32, #tpu.memory_space<vmem>>, vector<1x3x256xf32>
    %76 = vector.shape_cast %75 : vector<1x3x256xf32> to vector<3x256xf32>
    %c3_61 = arith.constant 3 : index
    %c0_62 = arith.constant 0 : index
    %77 = vector.load %arg4[%c3_61, %c0_62] : memref<32x256xf32, #tpu.memory_space<vmem>>, vector<3x256xf32>
    tpu.vector_store %arg4[%c3_61, %c0_62], %76 {strides = array<i32>} : memref<32x256xf32, #tpu.memory_space<vmem>>, vector<3x256xf32>,
    %c1_63 = arith.constant 1 : index
    %c0_64 = arith.constant 0 : index
    %c32_65 = arith.constant 32 : index
    %78 = vector.load %arg1[%c1_63, %c0_64, %c32_65] : memref<2x3x384xf32, #tpu.memory_space<vmem>>, vector<1x3x256xf32>
    %79 = vector.shape_cast %78 : vector<1x3x256xf32> to vector<3x256xf32>
    %c6_66 = arith.constant 6 : index
    %c0_67 = arith.constant 0 : index
    %80 = vector.load %arg4[%c6_66, %c0_67] : memref<32x256xf32, #tpu.memory_space<vmem>>, vector<3x256xf32>
    tpu.vector_store %arg4[%c6_66, %c0_67], %79 {strides = array<i32>} : memref<32x256xf32, #tpu.memory_space<vmem>>, vector<3x256xf32>,
    %c1_68 = arith.constant 1 : index
    %c0_69 = arith.constant 0 : index
    %c1_70 = arith.constant 1 : index
    %81 = vector.load %arg1[%c1_68, %c0_69, %c1_70] : memref<2x3x384xf32, #tpu.memory_space<vmem>>, vector<1x3x256xf32>
    %82 = vector.shape_cast %81 : vector<1x3x256xf32> to vector<3x256xf32>
    %c9_71 = arith.constant 9 : index
    %c0_72 = arith.constant 0 : index
    %83 = vector.load %arg4[%c9_71, %c0_72] : memref<32x256xf32, #tpu.memory_space<vmem>>, vector<3x256xf32>
    tpu.vector_store %arg4[%c9_71, %c0_72], %82 {strides = array<i32>} : memref<32x256xf32, #tpu.memory_space<vmem>>, vector<3x256xf32>,
    %c1_73 = arith.constant 1 : index
    %c0_74 = arith.constant 0 : index
    %c17_75 = arith.constant 17 : index
    %84 = vector.load %arg1[%c1_73, %c0_74, %c17_75] : memref<2x3x384xf32, #tpu.memory_space<vmem>>, vector<1x3x256xf32>
    %85 = vector.shape_cast %84 : vector<1x3x256xf32> to vector<3x256xf32>
    %c12_76 = arith.constant 12 : index
    %c0_77 = arith.constant 0 : index
    %86 = vector.load %arg4[%c12_76, %c0_77] : memref<32x256xf32, #tpu.memory_space<vmem>>, vector<3x256xf32>
    tpu.vector_store %arg4[%c12_76, %c0_77], %85 {strides = array<i32>} : memref<32x256xf32, #tpu.memory_space<vmem>>, vector<3x256xf32>,
    %c1_78 = arith.constant 1 : index
    %c0_79 = arith.constant 0 : index
    %c33_80 = arith.constant 33 : index
    %87 = vector.load %arg1[%c1_78, %c0_79, %c33_80] : memref<2x3x384xf32, #tpu.memory_space<vmem>>, vector<1x3x256xf32>
    %88 = vector.shape_cast %87 : vector<1x3x256xf32> to vector<3x256xf32>
    %c15_81 = arith.constant 15 : index
    %c0_82 = arith.constant 0 : index
    %89 = vector.load %arg4[%c15_81, %c0_82] : memref<32x256xf32, #tpu.memory_space<vmem>>, vector<3x256xf32>
    tpu.vector_store %arg4[%c15_81, %c0_82], %88 {strides = array<i32>} : memref<32x256xf32, #tpu.memory_space<vmem>>, vector<3x256xf32>,
    %c1_83 = arith.constant 1 : index
    %c0_84 = arith.constant 0 : index
    %c2_85 = arith.constant 2 : index
    %90 = vector.load %arg1[%c1_83, %c0_84, %c2_85] : memref<2x3x384xf32, #tpu.memory_space<vmem>>, vector<1x3x256xf32>
    %91 = vector.shape_cast %90 : vector<1x3x256xf32> to vector<3x256xf32>
    %c18_86 = arith.constant 18 : index
    %c0_87 = arith.constant 0 : index
    %92 = vector.load %arg4[%c18_86, %c0_87] : memref<32x256xf32, #tpu.memory_space<vmem>>, vector<3x256xf32>
    tpu.vector_store %arg4[%c18_86, %c0_87], %91 {strides = array<i32>} : memref<32x256xf32, #tpu.memory_space<vmem>>, vector<3x256xf32>,
    %c1_88 = arith.constant 1 : index
    %c0_89 = arith.constant 0 : index
    %c18_90 = arith.constant 18 : index
    %93 = vector.load %arg1[%c1_88, %c0_89, %c18_90] : memref<2x3x384xf32, #tpu.memory_space<vmem>>, vector<1x3x256xf32>
    %94 = vector.shape_cast %93 : vector<1x3x256xf32> to vector<3x256xf32>
    %c21_91 = arith.constant 21 : index
    %c0_92 = arith.constant 0 : index
    %95 = vector.load %arg4[%c21_91, %c0_92] : memref<32x256xf32, #tpu.memory_space<vmem>>, vector<3x256xf32>
    tpu.vector_store %arg4[%c21_91, %c0_92], %94 {strides = array<i32>} : memref<32x256xf32, #tpu.memory_space<vmem>>, vector<3x256xf32>,
    %c1_93 = arith.constant 1 : index
    %c0_94 = arith.constant 0 : index
    %c34_95 = arith.constant 34 : index
    %96 = vector.load %arg1[%c1_93, %c0_94, %c34_95] : memref<2x3x384xf32, #tpu.memory_space<vmem>>, vector<1x3x256xf32>
    %97 = vector.shape_cast %96 : vector<1x3x256xf32> to vector<3x256xf32>
    %c24_96 = arith.constant 24 : index
    %c0_97 = arith.constant 0 : index
    %98 = vector.load %arg4[%c24_96, %c0_97] : memref<32x256xf32, #tpu.memory_space<vmem>>, vector<3x256xf32>
    tpu.vector_store %arg4[%c24_96, %c0_97], %97 {strides = array<i32>} : memref<32x256xf32, #tpu.memory_space<vmem>>, vector<3x256xf32>,
    %c0_98 = arith.constant 0 : index
    %c0_99 = arith.constant 0 : index
    %99 = vector.load %arg4[%c0_98, %c0_99] : memref<32x256xf32, #tpu.memory_space<vmem>>, vector<9x256xf32>
    %100 = vector.broadcast %24 : vector<1x256xf32> to vector<9x256xf32>
    %101 = arith.mulf %99, %100 : vector<9x256xf32>
    %c0_100 = arith.constant 0 : index
    %c0_101 = arith.constant 0 : index
    %102 = vector.load %arg4[%c0_100, %c0_101] : memref<32x256xf32, #tpu.memory_space<vmem>>, vector<9x256xf32>
    tpu.vector_store %arg4[%c0_100, %c0_101], %101 {strides = array<i32>} : memref<32x256xf32, #tpu.memory_space<vmem>>, vector<9x256xf32>,
    %c18_102 = arith.constant 18 : index
    %c0_103 = arith.constant 0 : index
    %103 = vector.load %arg4[%c18_102, %c0_103] : memref<32x256xf32, #tpu.memory_space<vmem>>, vector<9x256xf32>
    %104 = vector.broadcast %28 : vector<1x256xf32> to vector<9x256xf32>
    %105 = arith.mulf %103, %104 : vector<9x256xf32>
    %c18_104 = arith.constant 18 : index
    %c0_105 = arith.constant 0 : index
    %106 = vector.load %arg4[%c18_104, %c0_105] : memref<32x256xf32, #tpu.memory_space<vmem>>, vector<9x256xf32>
    tpu.vector_store %arg4[%c18_104, %c0_105], %105 {strides = array<i32>} : memref<32x256xf32, #tpu.memory_space<vmem>>, vector<9x256xf32>,
    %c0_106 = arith.constant 0 : index
    %c0_107 = arith.constant 0 : index
    %107 = vector.load %arg2[%c0_106, %c0_107] : memref<8x32xf32, #tpu.memory_space<vmem>>, vector<8x32xf32>
    %c0_108 = arith.constant 0 : index
    %c0_109 = arith.constant 0 : index
    %108 = vector.load %arg4[%c0_108, %c0_109] : memref<32x256xf32, #tpu.memory_space<vmem>>, vector<32x256xf32>
    %cst_110 = arith.constant dense<0.000000e+00> : vector<8x256xf32>
    %109 = tpu.matmul %107, %108, %cst_110 {dimension_numbers = #tpu.dot_dimension_numbers<[1], [0], [0], [1], [0, 0, 1, 1], [], []>} : vector<8x32xf32>, vector<32x256xf32>, vector<8x256xf32> -> vector<8x256xf32>
    %cst_111 = arith.constant 0.000000e+00 : f32
    %110 = vector.broadcast %cst_111 : f32 to vector<8x256xf32>
    %111 = arith.maximumf %109, %110 : vector<8x256xf32>
    %c1_112 = arith.constant 1 : index
    %c0_113 = arith.constant 0 : index
    %c0_114 = arith.constant 0 : index
    %112 = vector.load %arg3[%c1_112, %c0_113, %c0_114] : memref<2x8x256xf32, #tpu.memory_space<vmem>>, vector<1x8x256xf32>
    %113 = vector.shape_cast %112 : vector<1x8x256xf32> to vector<8x256xf32>
    %114 = vector.shape_cast %111 : vector<8x256xf32> to vector<1x8x256xf32>
    tpu.vector_store %arg3[%c1_112, %c0_113, %c0_114], %114 {strides = array<i32>} : memref<2x8x256xf32, #tpu.memory_space<vmem>>, vector<1x8x256xf32>,
    return
  }
  func.func @transform_0(%arg0: i32) -> (i32, i32, i32) {
    %c0_i32 = arith.constant 0 : i32
    %c0_i32_0 = arith.constant 0 : i32
    %c0_i32_1 = arith.constant 0 : i32
    %c0_i32_2 = arith.constant 0 : i32
    return %c0_i32, %c0_i32_0, %c0_i32_1 : i32, i32, i32
  }
  func.func @transform_1(%arg0: i32) -> (i32, i32) {
    %c0_i32 = arith.constant 0 : i32
    %c0_i32_0 = arith.constant 0 : i32
    %c0_i32_1 = arith.constant 0 : i32
    return %c0_i32, %c0_i32_0 : i32, i32
  }
  func.func @transform_2(%arg0: i32) -> (i32, i32, i32) {
    %c0_i32 = arith.constant 0 : i32
    %c0_i32_0 = arith.constant 0 : i32
    %c0_i32_1 = arith.constant 0 : i32
    %c0_i32_2 = arith.constant 0 : i32
    return %c0_i32, %c0_i32_0, %c0_i32_1 : i32, i32, i32
  }
}

</mosaic_0001>

<bundles_post_ra>
// kernel: model_with_ref_forward.1
= control target key start
LH: loop header
LB: loop body
LE: loop exit
PB: predicated region body
PF: predicated region fallthrough
CT: control target
= control target key end

     0   :  { %v697_v3 = vmov 0.0   ;;  %s698_s17 = smov 96   ;;  %s699_s18 = smov 112   ;;  %v11_v12 = vlaneseq  ;;  %v700_v18 = vmov 1.0   ;;  %vm100_vm5 = vcmask 785408   ;;  %s961_s0 = inlined_call_operand.vmem [shape: f32[2,3,384], index: 0, kind: input, shape index: {}]   ;;  %s962_s1 = inlined_call_operand.vmem [shape: f32[8,32], index: 1, kind: input, shape index: {}]   ;;  %s963_s2 = inlined_call_operand.vmem [shape: f32[2,8,256], index: 2, kind: output, shape index: {}]  }
   0x1   :  { %v87_v0 = vld [vmem:[%s961_s0 + $0x8] sm:$0x7]  ;;  %v86_v2 = vld [vmem:[%s961_s0] sm:$0x77]  ;;  %18 = vst [vmem:[#allocation2 + $0x30] sm:$0xf0] %v697_v3  ;;  %333 = vmatprep.mubr.f32.mxu0 %v697_v3  ;;  %610 = vmatprep.mubr.f32.mxu1 %v697_v3 }
   0x2   :  { %v66_v1 = vld [vmem:[%s961_s0 + $0x8] sm:$0x7]  ;;  %19 = vst [vmem:[#allocation2 + $0x38] sm:$0xf0] %v697_v3  ;;  %v93_v4 = vrot.slane %v87_v0, 2  ;;  %v90_v6 = vcombine.high %v86_v2, %v86_v2  ;;  %v91_v13 = vrot.slane %v86_v2, 2 }
   0x3   :  { %v72_v5 = vrot.slane %v66_v1, 5  ;;  %v65_v7 = vld [vmem:[%s961_s0] sm:$0x77]  ;;  %vm13_vm0 = vcmp.lt.s32.totalorder %v11_v12, 256  ;;  %v173_v16 = vld [vmem:[%s961_s0 + $0x8] sm:$0x7] }
   0x4   :  { %v69_v8 = vcombine.high %v65_v7, %v65_v7  ;;  %98 = vrot.lane.b32.xlu1 %v93_v4, %s698_s17  ;;  %v92_v9 = vrot.slane %v90_v6, 2  ;;  %v172_v11 = vld [vmem:[%s961_s0] sm:$0x77]  ;;  %v70_v14 = vrot.slane %v65_v7, 5  ;;  %v179_v19 = vrot.slane %v173_v16, 6  ;;  %s701_s27 = smov 126  }
   0x5   :  { %77 = vrot.lane.b32.xlu0 %v72_v5, %s699_s18  ;;  %v176_v15 = vcombine.high %v172_v11, %v172_v11  ;;  %v193_v17 = vld [vmem:[%s961_s0] sm:$0x77]  ;;  %16 = vst.msk [vmem:[#allocation2 + $0x33] ss:$8 sm:$0x3] %vm13_vm0, %v700_v18  ;;  %v21_v23 = vand.u32 127, %v11_v12 }
   0x6   :  { %v71_v10 = vrot.slane %v69_v8, 5  ;;  %v197_v21 = vcombine.high %v193_v17, %v193_v17  ;;  %v194_v22 = vld [vmem:[%s961_s0 + $0x8] sm:$0x7]  ;;  %v214_v26 = vld [vmem:[%s961_s0] sm:$0x77]  ;;  %s702_s30 = smov 110  }
   0x7   :  { %v178_v20 = vrot.slane %v176_v15, 6  ;;  %v200_v24 = vrot.slane %v194_v22, 3  ;;  %v22_v27 = vadd.s32 128, %v21_v23  ;;  %v218_v28 = vcombine.high %v214_v26, %v214_v26  ;;  %v59_v31 = vld [vmem:[%s961_s0] sm:$0x77]  ;;  %s703_s9 = smov 94  }
   0x8   :  { %96 = vrot.lane.b32.xlu1 %v92_v9, %s698_s17  ;;  %v199_v25 = vrot.slane %v197_v21, 3  ;;  %v27_v30 = vand.u32 15, %v21_v23  ;;  %v215_v32 = vld [vmem:[%s961_s0 + $0x8] sm:$0x7]  ;;  %v109_v33 = vld [vmem:[%s961_s0] sm:$0x77]  ;;  %v61_v41 = vcombine.high %v59_v31, %v59_v31 }
   0x9   :  { %75 = vrot.lane.b32.xlu0 %v71_v10, %s699_s18  ;;  %v34_v29 = vand.u32 15, %v22_v27  ;;  %63 = vst [vmem:[#allocation2] sm:$0x7] %v59_v31  ;;  %v198_v38 = vrot.slane %v193_v17, 3  ;;  %v177_v39 = vrot.slane %v172_v11, 6  ;;  %v113_v40 = vcombine.high %v109_v33, %v109_v33  ;;  %s704_s14 = smov 127  }
   0xa   :  { %vm47_vm2 = vcmp.ne.s32.totalorder %v27_v30, 0  ;;  %vm53_vm4 = vcmp.ne.s32.totalorder %v27_v30, 15  ;;  %64 = vst [vmem:[#allocation2 + $0x8] sm:$0x7] %v61_v41  ;;  %v110_v43 = vld [vmem:[%s961_s0 + $0x8] sm:$0x7] }
   0xb   :  { %vm48_vm1 = vcmp.ne.s32.totalorder %v34_v29, 0  ;;  %vm54_vm3 = vcmp.ne.s32.totalorder %v34_v29, 15  ;;  %v770_v35 = vsel %vm47_vm2, 1.0, %v697_v3  ;;  %v774_v37 = vsel %vm53_vm4, 1.0, %v697_v3  ;;  %v149_v44 = vld [vmem:[%s961_s0] sm:$0x77] }
   0xc   :  { %94 = vrot.lane.b32.xlu1 %v91_v13, %s698_s17  ;;  %v768_v34 = vsel %vm48_vm1, 1.0, %v697_v3  ;;  %v772_v36 = vsel %vm54_vm3, 1.0, %v697_v3  ;;  %v115_v42 = vrot.slane %v113_v40, 7  ;;  %v116_v45 = vrot.slane %v110_v43, 7  ;;  %v130_v47 = vld [vmem:[%s961_s0] sm:$0x77] }
   0xd   :  { %73 = vrot.lane.b32.xlu0 %v70_v14, %s699_s18  ;;  %v153_v46 = vcombine.high %v149_v44, %v149_v44  ;;  %s705_s19 = smov 111   ;;  %v685_v49 = vld [vmem:[%s961_s0 + $0x8] ss:$0 sps:$4 sm:$0x77]   ;;  %s706_s24 = smov 95   ;;  %v114_v51 = vrot.slane %v109_v33, 7  ;;  %v134_v54 = vcombine.low %v130_v47, %v130_v47 }
   0xe   :  { %v150_v50 = vld [vmem:[%s961_s0 + $0x8] sm:$0x7]  ;;  %v632_v53 = vld [vmem:[%s961_s0 + $0xc] sm:$0x77]  ;;  %v154_v55 = vrot.slane %v149_v44, 1  ;;  %vm79_vm6 = vcmask 916480  }
   0xf   :  { %v155_v48 = vrot.slane %v153_v46, 1  ;;  %v156_v52 = vrot.slane %v150_v50, 1  ;;  %v355_v56 = vcombine.high %v632_v53, %v632_v53  ;;  %v633_v57 = vld [vmem:[%s961_s0 + $0x14] sm:$0x7]  ;;  %v634_v58 = vld [vmem:[%s961_s0 + $0xc] sm:$0x77] }
  0x10   :  { %184 = vrot.lane.b32.xlu1 %v179_v19, %s701_s27  ;;  %v358_v59 = vrot.slane %v633_v57, 5  ;;  %v375_v61 = vcombine.high %v634_v58, %v634_v58  ;;  %v635_v62 = vld [vmem:[%s961_s0 + $0x14] sm:$0x7]  ;;  %v642_v1 = vld [vmem:[%s961_s0 + $0xc] sm:$0x77]  ;;  %v376_v2 = vrot.slane %v634_v58, 2 }
  0x11   :  { %182 = vrot.lane.b32.xlu0 %v178_v20, %s701_s27  ;;  %v357_v60 = vrot.slane %v355_v56, 5  ;;  %v378_v63 = vrot.slane %v635_v62, 2  ;;  %v356_v3 = vrot.slane %v632_v53, 5  ;;  %v457_v4 = vcombine.high %v642_v1, %v642_v1  ;;  %v643_v5 = vld [vmem:[%s961_s0 + $0x14] sm:$0x7] }
  0x12   :  { %v377_v0 = vrot.slane %v375_v61, 2  ;;  %v644_v6 = vld [vmem:[%s961_s0 + $0xc] sm:$0x77]  ;;  %v460_v7 = vrot.slane %v643_v5, 6  ;;  %v645_v10 = vld [vmem:[%s961_s0 + $0x14] sm:$0x7] }
  0x13   :  { %v459_v8 = vrot.slane %v457_v4, 6  ;;  %v477_v9 = vcombine.high %v644_v6, %v644_v6  ;;  %v480_v11 = vrot.slane %v645_v10, 3  ;;  %v646_v13 = vld [vmem:[%s961_s0 + $0xc] sm:$0x77]  ;;  %v647_v15 = vld [vmem:[%s961_s0 + $0x14] sm:$0x7] }
  0x14   :  { %205 = vrot.lane.b32.xlu1 %v200_v24, %s702_s30  ;;  %v497_v14 = vcombine.high %v646_v13, %v646_v13  ;;  %v636_v16 = vld [vmem:[%s961_s0 + $0xc] sm:$0x77]  ;;  %v478_v17 = vrot.slane %v644_v6, 3  ;;  %v458_v18 = vrot.slane %v642_v1, 6  ;;  %v637_v21 = vld [vmem:[%s961_s0 + $0x14] sm:$0x7] }
  0x15   :  { %203 = vrot.lane.b32.xlu0 %v199_v25, %s702_s30  ;;  %v479_v12 = vrot.slane %v477_v9, 3  ;;  %v397_v19 = vcombine.high %v636_v16, %v636_v16  ;;  %v640_v22 = vld [vmem:[%s961_s0 + $0xc] sm:$0x77]  ;;  %v400_v23 = vrot.slane %v637_v21, 7  ;;  %v398_v29 = vrot.slane %v636_v16, 7 }
  0x16   :  { %v435_v24 = vcombine.high %v640_v22, %v640_v22  ;;  %v638_v25 = vld [vmem:[%s961_s0 + $0xc] sm:$0x77]  ;;  %v694_v27 = vld [vmem:[%s961_s0 + $0x14] ss:$0 sps:$4 sm:$0x77]   ;;  %vm186_vm7 = vcmask 1031168  }
  0x17   :  { %v399_v20 = vrot.slane %v397_v19, 7  ;;  %v417_v31 = vcombine.low %v638_v25, %v638_v25  ;;  %vm207_vm8 = vcmask 900096   ;;  %vm225_vm9 = vcmask 769024  }
  0x18   :  { %223 = vrot.lane.b32.xlu1 %v215_v32, %s703_s9  ;;  %v436_v32 = vrot.slane %v640_v22, 1  ;;  %vm123_vm10 = vcmask 1039360   ;;  %vm142_vm11 = vcmask 908288   ;;  %vm163_vm12 = vcmask 777216  }
  0x19   :  { %221 = vrot.lane.b32.xlu0 %v218_v28, %s703_s9  ;;  %v641_v28 = vld [vmem:[%s961_s0 + $0x14] sm:$0x7]  ;;  %vm265_vm13 = vcmask 261120  }
  0x1a   :  { %v438_v30 = vrot.slane %v641_v28, 1 }
  0x1c   :  { %201 = vrot.lane.b32.xlu1 %v198_v38, %s702_s30 }
  0x1d   :  { %180 = vrot.lane.b32.xlu0 %v177_v39, %s701_s27 }
  0x20   :  { %119 = vrot.lane.b32.xlu1 %v115_v42, %s704_s14 }
  0x21   :  { %219 = vrot.lane.b32.xlu0 %v214_v26, %s703_s9  ;;  %v437_v26 = vrot.slane %v435_v24, 1 }
  0x24   :  { %138 = vrot.lane.b32.xlu1 %v130_v47, %s705_s19  ;;  %v631_v47 = vld [vmem:[%s961_s0 + $0xc] sm:$0x77] }
  0x25   :  { %121 = vrot.lane.b32.xlu0 %v116_v45, %s704_s14 }
  0x28   :  { %159 = vrot.lane.b32.xlu1 %v155_v48, %s706_s24 }
  0x29   :  { %140 = vrot.lane.b32.xlu0 %v685_v49, %s705_s19 }
  0x2c   :  { %117 = vrot.lane.b32.xlu1 %v114_v51, %s704_s14 }
  0x2d   :  { %161 = vrot.lane.b32.xlu0 %v156_v52, %s706_s24  ;;  %v347_v52 = vcombine.high %v631_v47, %v631_v47 }
  0x30   :  { %157 = vrot.lane.b32.xlu1 %v154_v55, %s706_s24 }
  0x31   :  { %136 = vrot.lane.b32.xlu0 %v134_v54, %s705_s19 }
  0x34   :  { %363 = vrot.lane.b32.xlu1 %v358_v59, %s699_s18 }
  0x35   :  { %361 = vrot.lane.b32.xlu0 %v357_v60, %s699_s18 }
  0x38   :  { %383 = vrot.lane.b32.xlu1 %v378_v63, %s698_s17 }
  0x39   :  { %381 = vrot.lane.b32.xlu0 %v377_v0, %s698_s17 }
  0x3c   :  { %379 = vrot.lane.b32.xlu1 %v376_v2, %s698_s17 }
  0x3d   :  { %359 = vrot.lane.b32.xlu0 %v356_v3, %s699_s18 }
  0x40   :  { %465 = vrot.lane.b32.xlu1 %v460_v7, %s701_s27 }
  0x41   :  { %463 = vrot.lane.b32.xlu0 %v459_v8, %s701_s27 }
  0x44   :  { %485 = vrot.lane.b32.xlu1 %v480_v11, %s702_s30 }
  0x45   :  { %483 = vrot.lane.b32.xlu0 %v479_v12, %s702_s30 }
  0x48   :  { %502 = vrot.lane.b32.xlu1 %v647_v15, %s703_s9 }
  0x49   :  { %500 = vrot.lane.b32.xlu0 %v497_v14, %s703_s9 }
  0x4c   :  { %481 = vrot.lane.b32.xlu1 %v478_v17, %s702_s30 }
  0x4d   :  { %461 = vrot.lane.b32.xlu0 %v458_v18, %s701_s27 }
  0x50   :  { %403 = vrot.lane.b32.xlu1 %v399_v20, %s704_s14 }
  0x51   :  { %498 = vrot.lane.b32.xlu0 %v646_v13, %s703_s9 }
  0x54   :  { %421 = vrot.lane.b32.xlu1 %v638_v25, %s705_s19 }
  0x55   :  { %405 = vrot.lane.b32.xlu0 %v400_v23, %s704_s14 }
  0x58   :  { %441 = vrot.lane.b32.xlu1 %v437_v26, %s706_s24 }
  0x59   :  { %423 = vrot.lane.b32.xlu0 %v694_v27, %s705_s19 }
  0x5c   :  { %401 = vrot.lane.b32.xlu1 %v398_v29, %s704_s14 }
  0x5d   :  { %443 = vrot.lane.b32.xlu0 %v438_v30, %s706_s24 }
  0x60   :  { %439 = vrot.lane.b32.xlu1 %v436_v32, %s706_s24 }
  0x61   :  { %419 = vrot.lane.b32.xlu0 %v417_v31, %s705_s19 }
  0x76   :  { %v99_v33 = vpop.permute.xlu1 %98 }
  0x77   :  { %v78_v38 = vpop.permute.xlu0 %77 }
  0x7a   :  { %v97_v39 = vpop.permute.xlu1 %96 }
  0x7b   :  { %v76_v40 = vpop.permute.xlu0 %75  ;;  %v102_v41 = vsel %vm100_vm5, %v97_v39, %v99_v33 }
  0x7c   :  { %v81_v42 = vsel %vm79_vm6, %v76_v40, %v78_v38  ;;  %106 = vst [vmem:[#allocation2 + $0x18] ss:$-12 sps:$4 sm:$0xc1] %v102_v41  }
  0x7d   :  { %85 = vst [vmem:[#allocation2 + $0x8] sm:$0x38] %v81_v42 }
  0x7e   :  { %v95_v43 = vpop.permute.xlu1 %94 }
  0x7f   :  { %v74_v44 = vpop.permute.xlu0 %73  ;;  %v101_v45 = vsel %vm100_vm5, %v95_v43, %v97_v39 }
  0x80   :  { %v80_v46 = vsel %vm79_vm6, %v74_v44, %v76_v40  ;;  %105 = vst [vmem:[#allocation2 + $0x10] ss:$-12 sps:$4 sm:$0xc1] %v101_v45  }
  0x81   :  { %84 = vst [vmem:[#allocation2] sm:$0x38] %v80_v46 }
  0x82   :  { %v185_v48 = vpop.permute.xlu1 %184 }
  0x83   :  { %v183_v49 = vpop.permute.xlu0 %182  ;;  %v235_v50 = vld [vmem:[#allocation2 + $0x18] sm:$0x1] }
  0x84   :  { %v188_v51 = vsel %vm186_vm7, %v183_v49, %v185_v48  ;;  %v233_v53 = vld [vmem:[#allocation2 + $0x8] sm:$0xff]  ;;  %v239_v54 = vmul.f32 %v768_v34, %v235_v50 }
  0x85   :  { %192 = vst [vmem:[#allocation2 + $0x28] sm:$0x1c] %v188_v51  ;;  %v887_v55 = vmul.f32 %v768_v34, %v233_v53 }
  0x86   :  { %243 = vst [vmem:[#allocation2 + $0x18] sm:$0x1] %v239_v54  ;;  %v206_v56 = vpop.permute.xlu1 %205 }
  0x87   :  { %v204_v57 = vpop.permute.xlu0 %203  ;;  %241 = vst [vmem:[#allocation2 + $0x8] sm:$0xff] %v887_v55  ;;  %v234_v58 = vld [vmem:[#allocation2 + $0x10] sm:$0x1] }
  0x88   :  { %v209_v59 = vsel %vm207_vm8, %v204_v57, %v206_v56  ;;  %350 = vst [vmem:[#allocation2 + $0x8] sm:$0x7] %v347_v52  ;;  %v232_v60 = vld [vmem:[#allocation2] sm:$0xff]  ;;  %v238_v61 = vmul.f32 %v770_v35, %v234_v58 }
  0x89   :  { %213 = vst [vmem:[#allocation2 + $0x28] sm:$0xe0] %v209_v59  ;;  %v893_v62 = vmul.f32 %v770_v35, %v232_v60 }
  0x8a   :  { %242 = vst [vmem:[#allocation2 + $0x10] sm:$0x1] %v238_v61  ;;  %v224_v63 = vpop.permute.xlu1 %223 }
  0x8b   :  { %v222_v0 = vpop.permute.xlu0 %221  ;;  %240 = vst [vmem:[#allocation2] sm:$0xff] %v893_v62 }
  0x8c   :  { %v227_v1 = vsel %vm225_vm9, %v222_v0, %v224_v63  ;;  %349 = vst [vmem:[#allocation2] sm:$0x7] %v631_v47 }
  0x8d   :  { %231 = vst [vmem:[#allocation2 + $0x38] sm:$0x7] %v227_v1 }
  0x8e   :  { %v202_v2 = vpop.permute.xlu1 %201 }
  0x8f   :  { %v181_v3 = vpop.permute.xlu0 %180  ;;  %v208_v5 = vsel %vm207_vm8, %v202_v2, %v204_v57  ;;  %v919_v57 = vld [vmem:[%s962_s1] sm:$0xff] }
  0x90   :  { %v245_v4 = vld [vmem:[#allocation2 + $0x28] sm:$0xfc]  ;;  %v187_v6 = vsel %vm186_vm7, %v181_v3, %v183_v49  ;;  %212 = vst [vmem:[#allocation2 + $0x20] sm:$0xe0] %v208_v5 }
  0x91   :  { %v249_v7 = vmul.f32 %v772_v36, %v245_v4  ;;  %191 = vst [vmem:[#allocation2 + $0x20] sm:$0x1c] %v187_v6 }
  0x92   :  { %v120_v8 = vpop.permute.xlu1 %119 }
  0x93   :  { %253 = vst [vmem:[#allocation2 + $0x28] sm:$0xfc] %v249_v7  ;;  %v220_v9 = vpop.permute.xlu0 %219 }
  0x94   :  { %v247_v10 = vld [vmem:[#allocation2 + $0x38] sm:$0x7]  ;;  %v226_v11 = vsel %vm225_vm9, %v220_v9, %v222_v0 }
  0x95   :  { %v251_v12 = vmul.f32 %v772_v36, %v247_v10  ;;  %230 = vst [vmem:[#allocation2 + $0x30] sm:$0x7] %v226_v11 }
  0x96   :  { %v139_v13 = vpop.permute.xlu1 %138 }
  0x97   :  { %255 = vst [vmem:[#allocation2 + $0x38] sm:$0x7] %v251_v12  ;;  %v122_v14 = vpop.permute.xlu0 %121 }
  0x98   :  { %v244_v15 = vld [vmem:[#allocation2 + $0x20] sm:$0xfc]  ;;  %v125_v16 = vsel %vm123_vm10, %v120_v8, %v122_v14 }
  0x99   :  { %v248_v17 = vmul.f32 %v774_v37, %v244_v15  ;;  %129 = vst [vmem:[#allocation2 + $0x18] sm:$0xe] %v125_v16 }
  0x9a   :  { %v160_v18 = vpop.permute.xlu1 %159 }
  0x9b   :  { %252 = vst [vmem:[#allocation2 + $0x20] sm:$0xfc] %v248_v17  ;;  %v141_v19 = vpop.permute.xlu0 %140 }
  0x9c   :  { %v246_v20 = vld [vmem:[#allocation2 + $0x30] sm:$0x7]  ;;  %v144_v21 = vsel %vm142_vm11, %v139_v13, %v141_v19 }
  0x9d   :  { %v250_v22 = vmul.f32 %v774_v37, %v246_v20  ;;  %148 = vst [vmem:[#allocation2 + $0x18] sm:$0x70] %v144_v21 }
  0x9e   :  { %v118_v23 = vpop.permute.xlu1 %117  ;;  %v264_v46 = vld [vmem:[#allocation2 + $0x38] sm:$0xff] }
  0x9f   :  { %254 = vst [vmem:[#allocation2 + $0x30] sm:$0x7] %v250_v22  ;;  %v162_v24 = vpop.permute.xlu0 %161  ;;  %v124_v25 = vsel %vm123_vm10, %v118_v23, %v120_v8 }
  0xa0   :  { %v165_v26 = vsel %vm163_vm12, %v160_v18, %v162_v24  ;;  %128 = vst [vmem:[#allocation2 + $0x10] sm:$0xe] %v124_v25 }
  0xa1   :  { %169 = vst [vmem:[#allocation2 + $0x28] ss:$-12 sps:$4 sm:$0x83] %v165_v26  }
  0xa2   :  { %v158_v27 = vpop.permute.xlu1 %157 }
  0xa3   :  { %v137_v28 = vpop.permute.xlu0 %136  ;;  %v164_v29 = vsel %vm163_vm12, %v158_v27, %v160_v18 }
  0xa4   :  { %v143_v30 = vsel %vm142_vm11, %v137_v28, %v139_v13  ;;  %168 = vst [vmem:[#allocation2 + $0x20] ss:$-12 sps:$4 sm:$0x83] %v164_v29  }
  0xa5   :  { %147 = vst [vmem:[#allocation2 + $0x10] sm:$0x70] %v143_v30 }
  0xa6   :  { %v364_v31 = vpop.permute.xlu1 %363  ;;  %v263_v53 = vld [vmem:[#allocation2 + $0x30] sm:$0xff] }
  0xa7   :  { %v362_v32 = vpop.permute.xlu0 %361 }
  0xa8   :  { %v366_v33 = vsel %vm79_vm6, %v362_v32, %v364_v31  ;;  %v260_v38 = vld [vmem:[#allocation2 + $0x18] sm:$0xff]  ;;  %v262_v42 = vld [vmem:[#allocation2 + $0x28] sm:$0xff] }
  0xa9   :  { %370 = vst [vmem:[#allocation2 + $0x8] sm:$0x38] %v366_v33  ;;  %v651_v39 = vpack.c.bf16 %v260_v38, %v887_v55  ;;  %v655_v47 = vpack.c.bf16 %v264_v46, %v262_v42 }
  0xaa   :  { %v384_v40 = vpop.permute.xlu1 %383 }
  0xab   :  { %v382_v41 = vpop.permute.xlu0 %381  ;;  %652 = vmatprep.subr.bf16.mxu0 %v651_v39  ;;  %v261_v48 = vld [vmem:[#allocation2 + $0x20] sm:$0xff] }
  0xac   :  { %v386_v43 = vsel %vm100_vm5, %v382_v41, %v384_v40  ;;  %v259_v44 = vld [vmem:[#allocation2 + $0x10] sm:$0xff]  ;;  %v657_v54 = vpack.c.bf16 %v263_v53, %v261_v48 }
  0xad   :  { %390 = vst [vmem:[#allocation2 + $0x18] ss:$-12 sps:$4 sm:$0xc1] %v386_v43   ;;  %v653_v45 = vpack.c.bf16 %v259_v44, %v893_v62 }
  0xae   :  { %v380_v49 = vpop.permute.xlu1 %379 }
  0xaf   :  { %v360_v50 = vpop.permute.xlu0 %359  ;;  %654 = vmatpush1.bf16.msra.mxu0 %v653_v45  ;;  %v385_v51 = vsel %vm100_vm5, %v380_v49, %v382_v41 }
  0xb0   :  { %v365_v52 = vsel %vm79_vm6, %v360_v50, %v362_v32  ;;  %656 = vmatprep.subr.bf16.mxu0 %v655_v47  ;;  %389 = vst [vmem:[#allocation2 + $0x10] ss:$-12 sps:$4 sm:$0xc1] %v385_v51  }
  0xb1   :  { %369 = vst [vmem:[#allocation2] sm:$0x38] %v365_v52 }
  0xb2   :  { %v466_v55 = vpop.permute.xlu1 %465 }
  0xb3   :  { %v464_v56 = vpop.permute.xlu0 %463  ;;  %658 = vmatpush1.bf16.msra.mxu0 %v657_v54 }
  0xb4   :  { %v511_v58 = vld [vmem:[#allocation2 + $0x8] sm:$0xff]  ;;  %v513_v59 = vld [vmem:[#allocation2 + $0x18] sm:$0x1]  ;;  %v468_v60 = vsel %vm186_vm7, %v464_v56, %v466_v55 }
  0xb5   :  { %v923_v61 = vmul.f32 %v768_v34, %v511_v58  ;;  %v517_v62 = vmul.f32 %v768_v34, %v513_v59  ;;  %472 = vst [vmem:[#allocation2 + $0x28] sm:$0x1c] %v468_v60 }
  0xb6   :  { %630 = vmatmul.mubr.msk.f32.vlgmr.msra.gmra.mrb[0].mxu0 %vm265_vm13, %v919_v57  ;;  %v486_v63 = vpop.permute.xlu1 %485 }
  0xb7   :  { %519 = vst [vmem:[#allocation2 + $0x8] sm:$0xff] %v923_v61  ;;  %521 = vst [vmem:[#allocation2 + $0x18] sm:$0x1] %v517_v62  ;;  %v484_v0 = vpop.permute.xlu0 %483  ;;  %v512_v1 = vld [vmem:[#allocation2 + $0x10] sm:$0x1] }
  0xb8   :  { %v510_v2 = vld [vmem:[#allocation2] sm:$0xff]  ;;  %v488_v3 = vsel %vm207_vm8, %v484_v0, %v486_v63  ;;  %v516_v4 = vmul.f32 %v770_v35, %v512_v1 }
  0xb9   :  { %v514_v5 = vmul.f32 %v770_v35, %v510_v2  ;;  %492 = vst [vmem:[#allocation2 + $0x28] sm:$0xe0] %v488_v3 }
  0xba   :  { %520 = vst [vmem:[#allocation2 + $0x10] sm:$0x1] %v516_v4  ;;  %v503_v34 = vpop.permute.xlu1 %502 }
  0xbb   :  { %518 = vst [vmem:[#allocation2] sm:$0xff] %v514_v5  ;;  %v501_v6 = vpop.permute.xlu0 %500 }
  0xbc   :  { %v505_v7 = vsel %vm225_vm9, %v501_v6, %v503_v34 }
  0xbd   :  { %509 = vst [vmem:[#allocation2 + $0x38] sm:$0x7] %v505_v7 }
  0xbe   :  { %v482_v8 = vpop.permute.xlu1 %481 }
  0xbf   :  { %v462_v9 = vpop.permute.xlu0 %461  ;;  %v487_v11 = vsel %vm207_vm8, %v482_v8, %v484_v0 }
  0xc0   :  { %v523_v10 = vld [vmem:[#allocation2 + $0x28] sm:$0xfc]  ;;  %v467_v12 = vsel %vm186_vm7, %v462_v9, %v464_v56  ;;  %491 = vst [vmem:[#allocation2 + $0x20] sm:$0xe0] %v487_v11 }
  0xc1   :  { %v527_v13 = vmul.f32 %v772_v36, %v523_v10  ;;  %471 = vst [vmem:[#allocation2 + $0x20] sm:$0x1c] %v467_v12 }
  0xc2   :  { %v404_v35 = vpop.permute.xlu1 %403 }
  0xc3   :  { %531 = vst [vmem:[#allocation2 + $0x28] sm:$0xfc] %v527_v13  ;;  %v499_v14 = vpop.permute.xlu0 %498 }
  0xc4   :  { %v525_v15 = vld [vmem:[#allocation2 + $0x38] sm:$0x7]  ;;  %v504_v16 = vsel %vm225_vm9, %v499_v14, %v501_v6 }
  0xc5   :  { %v529_v17 = vmul.f32 %v772_v36, %v525_v15  ;;  %508 = vst [vmem:[#allocation2 + $0x30] sm:$0x7] %v504_v16 }
  0xc6   :  { %v422_v18 = vpop.permute.xlu1 %421 }
  0xc7   :  { %533 = vst [vmem:[#allocation2 + $0x38] sm:$0x7] %v529_v17  ;;  %v406_v19 = vpop.permute.xlu0 %405 }
  0xc8   :  { %v522_v20 = vld [vmem:[#allocation2 + $0x20] sm:$0xfc]  ;;  %v408_v21 = vsel %vm123_vm10, %v404_v35, %v406_v19 }
  0xc9   :  { %v526_v22 = vmul.f32 %v774_v37, %v522_v20  ;;  %412 = vst [vmem:[#allocation2 + $0x18] sm:$0xe] %v408_v21 }
  0xca   :  { %v442_v23 = vpop.permute.xlu1 %441 }
  0xcb   :  { %530 = vst [vmem:[#allocation2 + $0x20] sm:$0xfc] %v526_v22  ;;  %v424_v24 = vpop.permute.xlu0 %423 }
  0xcc   :  { %v524_v25 = vld [vmem:[#allocation2 + $0x30] sm:$0x7]  ;;  %v426_v26 = vsel %vm142_vm11, %v422_v18, %v424_v24 }
  0xcd   :  { %v528_v27 = vmul.f32 %v774_v37, %v524_v25  ;;  %430 = vst [vmem:[#allocation2 + $0x18] sm:$0x70] %v426_v26 }
  0xce   :  { %v402_v36 = vpop.permute.xlu1 %401  ;;  %v542_v43 = vld [vmem:[#allocation2 + $0x38] sm:$0xff] }
  0xcf   :  { %532 = vst [vmem:[#allocation2 + $0x30] sm:$0x7] %v528_v27  ;;  %v444_v28 = vpop.permute.xlu0 %443  ;;  %v407_v29 = vsel %vm123_vm10, %v402_v36, %v404_v35 }
  0xd0   :  { %v446_v30 = vsel %vm163_vm12, %v442_v23, %v444_v28  ;;  %411 = vst [vmem:[#allocation2 + $0x10] sm:$0xe] %v407_v29 }
  0xd1   :  { %450 = vst [vmem:[#allocation2 + $0x28] ss:$-12 sps:$4 sm:$0x83] %v446_v30  }
  0xd2   :  { %v440_v31 = vpop.permute.xlu1 %439 }
  0xd3   :  { %v420_v32 = vpop.permute.xlu0 %419  ;;  %v445_v33 = vsel %vm163_vm12, %v440_v31, %v442_v23 }
  0xd4   :  { %v425_v38 = vsel %vm142_vm11, %v420_v32, %v422_v18  ;;  %449 = vst [vmem:[#allocation2 + $0x20] ss:$-12 sps:$4 sm:$0x83] %v445_v33  }
  0xd5   :  { %429 = vst [vmem:[#allocation2 + $0x10] sm:$0x70] %v425_v38 }
  0xd6   :  { %v541_v46 = vld [vmem:[#allocation2 + $0x30] sm:$0xff] }
  0xd8   :  { %v538_v39 = vld [vmem:[#allocation2 + $0x18] sm:$0xff]  ;;  %v540_v40 = vld [vmem:[#allocation2 + $0x28] sm:$0xff] }
  0xd9   :  { %v659_v37 = vpack.c.bf16 %v538_v39, %v923_v61  ;;  %v663_v44 = vpack.c.bf16 %v542_v43, %v540_v40 }
  0xdb   :  { %660 = vmatprep.subr.bf16.mxu1 %v659_v37  ;;  %v539_v45 = vld [vmem:[#allocation2 + $0x20] sm:$0xff] }
  0xdc   :  { %v537_v41 = vld [vmem:[#allocation2 + $0x10] sm:$0xff]  ;;  %v665_v47 = vpack.c.bf16 %v541_v46, %v539_v45 }
  0xdd   :  { %v661_v42 = vpack.c.bf16 %v537_v41, %v514_v5 }
  0xdf   :  { %662 = vmatpush1.bf16.msra.mxu1 %v661_v42 }
  0xe0   :  { %664 = vmatprep.subr.bf16.mxu1 %v663_v44 }
  0xe3   :  { %666 = vmatpush1.bf16.msra.mxu1 %v665_v47 }
  0xe6   :  { %648 = vmatmul.mubr.msk.f32.vlgmr.msra.gmra.mrb[0].mxu1 %vm265_vm13, %v919_v57 }
 0x189   :  { %v335_v48 = vpop.f32.mrb[0].mxu0 }
 0x18a   :  { %v340_v49 = vmax.f32 %v335_v48, 0.0  ;;  %v337_v50 = vpop.f32.mrb[1].mxu0 }
 0x18b   :  { %v341_v51 = vmax.f32 %v337_v50, 0.0 }
 0x18c   :  { %342 = vst [vmem:[%s963_s2] sm:$0xff] %v340_v49 }
 0x18d   :  { %343 = vst [vmem:[%s963_s2 + $0x8] sm:$0xff] %v341_v51 }
 0x1b9   :  { %v612_v52 = vpop.f32.mrb[0].mxu1 }
 0x1ba   :  { %v617_v53 = vmax.f32 %v612_v52, 0.0  ;;  %v614_v54 = vpop.f32.mrb[1].mxu1 }
 0x1bb   :  { %v618_v55 = vmax.f32 %v614_v54, 0.0 }
 0x1bc   :  { %649 = vst [vmem:[%s963_s2 + $0x10] sm:$0xff] %v617_v53 }
 0x1bd   :  { %650 = vst [vmem:[%s963_s2 + $0x18] sm:$0xff] %v618_v55 }

</bundles_post_ra>
